<compile_context>
chip_gen: v6e
topology: v6e:2x2x1
jax: 0.10.0
libtpu: 0.0.40
codegen_flags: <defaults>
</compile_context>

<pallas_src>
import jax
import jax.numpy as jnp
from jax import lax
from jax.experimental import pallas as pl
from jax.experimental.pallas import tpu as pltpu


def _make_linear_leaky_relu_kernel(negative_slope):
    slope = float(negative_slope)

    def kernel(x_ref, w_ref, o_ref):
        # x_ref: (B, IN) f32, w_ref: (OUT, IN) f32 (torch Linear layout)
        x = x_ref[...]
        w = w_ref[...]
        # x @ W^T without emitting a transpose: contract IN (axis 1) of both.
        v1 = lax.dot_general(
            x, w,
            dimension_numbers=(((1,), (1,)), ((), ())),
            preferred_element_type=jnp.float32,
        )  # (B, OUT), accumulated in f32 on the MXU
        if 0.0 <= slope <= 1.0:
            # max(v1, slope*v1) == leaky_relu(v1, slope) for slope in [0, 1]
            out = jnp.maximum(v1, v1 * slope)
        else:
            out = jnp.where(v1 > 0, v1, v1 * slope)
        o_ref[...] = out.astype(o_ref.dtype)

    return kernel


def linear_leaky_relu(x, weight, negative_slope=0.01):
    """x: (B, IN) f32, weight: (OUT, IN) f32 (torch Linear layout, untransposed)."""
    B, _ = x.shape
    OUT = weight.shape[0]

    return pl.pallas_call(
        _make_linear_leaky_relu_kernel(negative_slope),
        out_shape=jax.ShapeDtypeStruct((B, OUT), jnp.float32),
        # No grid: whole (tiny) arrays are single VMEM-resident blocks, so no
        # per-step pipeline bookkeeping is generated.
        in_specs=[
            pl.BlockSpec(memory_space=pltpu.MemorySpace.VMEM),
            pl.BlockSpec(memory_space=pltpu.MemorySpace.VMEM),
        ],
        out_specs=pl.BlockSpec(memory_space=pltpu.MemorySpace.VMEM),
    )(x, weight)


def reference(x, weight, negative_slope):
    v1 = x @ weight.T
    return jnp.where(v1 > 0, v1, v1 * negative_slope)


if __name__ == "__main__":
    key = jax.random.PRNGKey(0)
    k_w, k_x = jax.random.split(key)

    IN_FEATURES, OUT_FEATURES = 6, 8
    negative_slope = 0.01

    # Deterministic "Linear(6, 8, bias=False)" weight, torch layout (OUT, IN).
    bound = 1.0 / (IN_FEATURES ** 0.5)
    weight = jax.random.uniform(
        k_w, (OUT_FEATURES, IN_FEATURES), dtype=jnp.float32,
        minval=-bound, maxval=bound)

    # x2 = torch.randn(1, 6)
    x2 = jax.random.normal(k_x, (1, IN_FEATURES), dtype=jnp.float32)

    out = linear_leaky_relu(x2, weight, negative_slope)
    out = jax.block_until_ready(out)

    ref = reference(x2, weight, negative_slope)
    assert out.shape == (1, OUT_FEATURES)
    assert jnp.allclose(out, ref, atol=1e-5, rtol=1e-5)

    print("KERNEL_OK")
</pallas_src>

<mosaic_0001>
module attributes {stable_mosaic.version = 11 : i64} {
  func.func @kernel(%arg0: memref<1x6xf32, #tpu.memory_space<vmem>>, %arg1: memref<8x6xf32, #tpu.memory_space<vmem>>, %arg2: memref<1x8xf32, #tpu.memory_space<vmem>>) attributes {dimension_semantics = [], scalar_prefetch = 0 : i64, scratch_operands = 0 : i64, tpu.core_type = #tpu.core_type<tc>} {
    %c0 = arith.constant 0 : index
    %c0_0 = arith.constant 0 : index
    %0 = vector.load %arg0[%c0, %c0_0] : memref<1x6xf32, #tpu.memory_space<vmem>>, vector<1x6xf32>
    %c0_1 = arith.constant 0 : index
    %c0_2 = arith.constant 0 : index
    %1 = vector.load %arg1[%c0_1, %c0_2] : memref<8x6xf32, #tpu.memory_space<vmem>>, vector<8x6xf32>
    %cst = arith.constant dense<0.000000e+00> : vector<1x8xf32>
    %2 = tpu.matmul %0, %1, %cst {dimension_numbers = #tpu.dot_dimension_numbers<[1], [1], [0], [0], [0, 0, 1, 0], [], []>} : vector<1x6xf32>, vector<8x6xf32>, vector<1x8xf32> -> vector<1x8xf32>
    %cst_3 = arith.constant 0.00999999977 : f32
    %3 = vector.broadcast %cst_3 : f32 to vector<1x8xf32>
    %4 = arith.mulf %2, %3 : vector<1x8xf32>
    %5 = arith.maximumf %2, %4 : vector<1x8xf32>
    %c0_4 = arith.constant 0 : index
    %c0_5 = arith.constant 0 : index
    %6 = vector.load %arg2[%c0_4, %c0_5] : memref<1x8xf32, #tpu.memory_space<vmem>>, vector<1x8xf32>
    tpu.vector_store %arg2[%c0_4, %c0_5], %5 {strides = array<i32>} : memref<1x8xf32, #tpu.memory_space<vmem>>, vector<1x8xf32>,
    return
  }
}

</mosaic_0001>

<bundles_post_ra>
// kernel: tpu_custom_call.1
= control target key start
LH: loop header
LB: loop body
LE: loop exit
PB: predicated region body
PF: predicated region fallthrough
CT: control target
= control target key end

     0   :  { %7 = vsyncpa [#allocation3], 0  ;;  %s244_s0 = inlined_call_operand.hbm [shape: f32[1,6], index: 0, kind: input, shape index: {}]   ;;  %s245_s1 = inlined_call_operand.hbm [shape: f32[8,6], index: 1, kind: input, shape index: {}]   ;;  %s246_s2 = inlined_call_operand.hbm [shape: f32[1,8], index: 2, kind: output, shape index: {}]  }
   0x1   :  { %8 = vsyncpa [#allocation6], 0 }
   0x2   :  { %9 = vsyncpa [#allocation4], 0  ;;  %s215_s9 = smov [#allocation2]   ;;  %s216_s11 = smov [#allocation5]  }
   0x3   :  { %s16_s10 = sshll.u32 %s215_s9, 4  ;;  %s26_s12 = sshll.u32 %s216_s11, 4  ;;  %s17_s10 = int_to_ptr.vmem [resolvable:$true] %s16_s10  ;;  %s27_s12 = int_to_ptr.vmem [resolvable:$true] %s26_s12 }
   0x4   :  { %s157_s13 = scalar_lea.vmem %s17_s10, 16  ;;  %s161_s14 = scalar_lea.vmem %s17_s10, 32 }
   0x5   :  { %p158_p0 = scmp.ne.s32.totalorder %s17_s10, %s157_s13  ;;  %p162_p1 = scmp.lt.s32.totalorder %s17_s10, %s17_s10 }
   0x6   :  { %p163_p2 = scmp.lt.s32.totalorder %s161_s14, %s157_s13 }
   0x8   :  { %p164_p3 = por %p163_p2, %p162_p1 }
   0xa   :  { %p165_p4 = pnand %p164_p3, %p158_p0 }
   0xc   :  { %168 = shalt.err (!%p165_p4)
}
   0xd   :  { %19 = dma.hbm_to_vmem [thread:$0]  %s244_s0, 16, %s17_s10, [#allocation3]  }
   0xe   :  { %s177_s17 = scalar_lea.vmem %s27_s12, 128  ;;  %p182_p6 = scmp.lt.s32.totalorder %s27_s12, %s27_s12 }
   0xf   :  { %p178_p5 = scmp.ne.s32.totalorder %s27_s12, %s177_s17  ;;  %p183_p7 = scmp.lt.s32.totalorder %s177_s17, %s177_s17 }
  0x11   :  { %p184_p8 = por %p183_p7, %p182_p6 }
  0x13   :  { %p185_p9 = pnand %p184_p8, %p178_p5 }
  0x15   :  { %188 = shalt.err (!%p185_p9)
}
  0x16   :  { %29 = dma.hbm_to_vmem [thread:$0]  %s245_s1, 128, %s27_s12, [#allocation6]  }
  0x17   :  { %209 = dma.done.wait [#allocation3], 16  }
  0x18   :  { %210 = vsyncadd [#allocation3], 4294967280 }
  0x19   :  { %211 = dma.done.wait [#allocation6], 128  }
  0x1a   :  { %212 = vsyncadd [#allocation6], 4294967168  ;;  %v217_v0 = vmov 0.0   ;;  %vm218_vm0 = vmmov 0   ;;  %vm38_vm1 = vcmask 48128   ;;  %v37_v1 = vld [vmem:[#allocation5] sm:$0xff] }
  0x1b   :  { %139 = vmatprep.subr.mxu0 %v217_v0  ;;  %141 = vmatprep.mubr.msk.f32.mxu0 %vm218_vm0, %v217_v0  ;;  %v36_v2 = vld [vmem:[#allocation2] sm:$0x1]  ;;  %s219_s0 = smov [#allocation7]   ;;  %vm117_vm2 = vcmask 57344  }
  0x1c   :  { %140 = vmatpush3.xpose.msk.msra.mxu0 %vm38_vm1, %v37_v1  ;;  %s125_s20 = sshll.u32 %s219_s0, 4  ;;  %s126_s20 = int_to_ptr.vmem [resolvable:$true] %s125_s20 }
  0x1d   :  { %s189_s1 = scalar_lea.vmem %s126_s20, 16  ;;  %s193_s21 = scalar_lea.vmem %s126_s20, 32 }
  0x1e   :  { %p190_p10 = scmp.ne.s32.totalorder %s126_s20, %s189_s1  ;;  %p194_p11 = scmp.lt.s32.totalorder %s126_s20, %s126_s20 }
  0x1f   :  { %142 = vmatmul.mubr.msk.f32.vlgmr.msra.gmra.mxu0 %vm38_vm1, %v36_v2  ;;  %p195_p12 = scmp.lt.s32.totalorder %s193_s21, %s189_s1 }
  0x21   :  { %p196_p13 = por %p195_p12, %p194_p11 }
  0x23   :  { %p197_p0 = pnand %p196_p13, %p190_p10 }
  0xdf   :  { %v111_v3 = vpop.f32.mrf.mxu0 }
  0xe0   :  { %v115_v4 = vmul.f32 0.01, %v111_v3 }
  0xe1   :  { %v143_v5 = vpop.f32.mrf.mxu0 }
  0xe2   :  { %v116_v6 = vmax.f32 %v111_v3, %v115_v4 }
  0xe4   :  { %118 = vst.msk [vmem:[#allocation7] sm:$0x1] %vm117_vm2, %v116_v6 }
  0xe5   :  { %200 = shalt.err (!%p197_p0)
}
  0xe6   :  { %128 = dma.vmem_to_hbm [thread:$0]  %s126_s20, 16, %s246_s2, [#allocation4]  }
  0xe7   :  { %213 = dma.done.wait [#allocation4], 16  }
  0xe8   :  { %214 = vsyncadd [#allocation4], 4294967280 }
  0xe9   :  { %132 = vsyncpa [#allocation3], 1 }
  0xea   :  { %133 = vsyncpa [#allocation6], 1 }
  0xeb   :  { %134 = vsyncpa [#allocation4], 1 }

</bundles_post_ra>
